<compile_context>
chip_gen: v7x
topology: tpu7x:2x2x1
jax: 0.10.0
libtpu: 0.0.40
codegen_flags: <defaults>
</compile_context>

<pallas_src>
import functools

import jax
import jax.numpy as jnp
from jax.experimental import pallas as pl
from jax.experimental.pallas import tpu as pltpu


def _cdiv(a, b):
    return (a + b - 1) // b


def _round_up(x, m):
    return _cdiv(x, m) * m


def _dice_ce_kernel(x_ref, t_ref, out_ref, *, ignore_index, num_channels, tile_rows):
    """x_ref: (C, TS, 128) logits; t_ref: (TS, 128) int32; out_ref: (24, 128) f32 partials.

    out_ref rows 0:8  -> dice intersection partial sums
    out_ref rows 8:16 -> sum of +log p_target over valid pixels (negated in wrapper)
    out_ref rows 16:24-> valid (non-ignored, non-pad) pixel count
    """
    C = num_channels
    TS = tile_rows

    @pl.when(pl.program_id(2) == 0)
    def _init():
        out_ref[...] = jnp.zeros_like(out_ref)

    t = t_ref[...]                                            # (TS, 128) int32
    # pad pixels carry sentinel -1: excluded from CE *and* (via empty one-hot) from dice
    valid = jnp.logical_and(t != ignore_index, t >= 0)        # CE mask
    valid_f = valid.astype(jnp.float32)
    t_dice = jnp.where(t == ignore_index, 0, t)               # ignored -> class 0 (dice); pad stays -1

    # Upcast once per channel (bf16 inputs supported), keep channel as leading axis.
    xs = [x_ref[c].astype(jnp.float32) for c in range(C)]     # C x (TS, 128)

    # Running max over channels: dense VPU maxima on packed (TS,128) tiles.
    m = xs[0]
    for c in range(1, C):
        m = jnp.maximum(m, xs[c])

    # One pass over channels: softmax denominator + target-class selections.
    s = jnp.zeros((TS, 128), jnp.float32)
    e_t = jnp.zeros((TS, 128), jnp.float32)
    x_t = jnp.zeros((TS, 128), jnp.float32)
    for c in range(C):
        ec = jnp.exp(xs[c] - m)                               # EUP; only C exps per pixel
        s = s + ec
        sel = t_dice == c                                     # pad rows never match -> 0
        e_t = e_t + jnp.where(sel, ec, 0.0)
        x_t = x_t + jnp.where(sel, xs[c], 0.0)

    p_t = e_t / s                                             # softmax prob at target (no 2nd exp)
    logp_t = (x_t - m) - jnp.log(s)                           # log-softmax at target (finite on pad)

    def fold8(v):                                             # (TS,128) -> (8,128) partial sums
        acc = v[0:8, :]
        for k in range(1, TS // 8):
            acc = acc + v[8 * k:8 * (k + 1), :]
        return acc

    # Accumulate folded partials straight into the resident output block
    # (single small RMW per accumulator per step).
    out_ref[0:8, :] = out_ref[0:8, :] + fold8(p_t)
    out_ref[8:16, :] = out_ref[8:16, :] + fold8(logp_t * valid_f)
    out_ref[16:24, :] = out_ref[16:24, :] + fold8(valid_f)


def dice_cross_entropy_loss(logits, targets, *, dice_weight=0.5,
                            ignore_index=255, smooth=1.0, tile_pixels=65536):
    """logits: (N, C, H, W) float (f32 or bf16); targets: (N, H, W) int. Returns scalar loss."""
    N, C, H, W = logits.shape
    assert C > 1, "kernel implements the multi-class softmax path only"
    HW = H * W
    rows = _cdiv(HW, 128)
    itemsize = jnp.dtype(logits.dtype).itemsize

    # Pick tile rows: as large as the VMEM budget allows (amortizes step overhead),
    # conservative enough for v7x's 64 MiB physical / per-TC VMEM.
    budget = 40 * 1024 * 1024
    per_row_bytes = 128 * (2 * C * itemsize + 2 * 4)          # dbl-buffered logits + int32 targets
    max_rows_budget = max(8, (budget // per_row_bytes) // 8 * 8)
    target_rows = max(8, (int(tile_pixels) // 128) // 8 * 8)
    ts = max(8, min(target_rows, max_rows_budget, _round_up(rows, 8)) // 8 * 8)

    tiles_needed = _cdiv(rows, ts)
    # Tile-group axis so v7x's two TensorCores both get work even when N == 1.
    G = 2 if (N == 1 and tiles_needed >= 2) else 1
    T = _cdiv(tiles_needed, G)
    rows_p = G * T * ts
    HWp = rows_p * 128

    x = logits.reshape(N, C, HW)                              # free reshape, no dtype cast
    t = targets.reshape(N, HW).astype(jnp.int32)
    if HWp != HW:
        # Pad once: zero logits + sentinel (-1) targets -> padded pixels vanish from all sums.
        x = jnp.pad(x, ((0, 0), (0, 0), (0, HWp - HW)))
        t = jnp.pad(t, ((0, 0), (0, HWp - HW)), constant_values=-1)
    x = x.reshape(N, C, rows_p, 128)
    t = t.reshape(N, rows_p, 128)

    kernel = functools.partial(
        _dice_ce_kernel,
        ignore_index=int(ignore_index),
        num_channels=C,
        tile_rows=ts,
    )

    vmem_needed = (2 * C * ts * 128 * itemsize       # double-buffered logits tile
                   + 2 * ts * 128 * 4                # double-buffered int32 target tile
                   + (C + 8) * ts * 128 * 4          # in-kernel f32 temporaries
                   + 2 * 24 * 128 * 4)               # output block
    vmem_limit = int(min(56 * 1024 * 1024,
                         max(32 * 1024 * 1024, vmem_needed + 4 * 1024 * 1024)))

    out = pl.pallas_call(
        kernel,
        out_shape=jax.ShapeDtypeStruct((N, G, 24, 128), jnp.float32),
        grid_spec=pltpu.PrefetchScalarGridSpec(
            num_scalar_prefetch=0,
            grid=(N, G, T),
            in_specs=[
                # (C, TS, 128): pixels fully lane/sublane dense, channels on leading axis.
                pl.BlockSpec((None, C, ts, 128),
                             lambda n, g, tt: (n, 0, g * T + tt, 0)),
                # (TS, 128) int32 targets.
                pl.BlockSpec((None, ts, 128),
                             lambda n, g, tt: (n, g * T + tt, 0)),
            ],
            # Per-(batch, tile-group) partial-sum block, resident across the tile axis.
            out_specs=pl.BlockSpec((None, None, 24, 128),
                                   lambda n, g, tt: (n, g, 0, 0)),
        ),
        compiler_params=pltpu.CompilerParams(
            dimension_semantics=("parallel", "parallel", "arbitrary"),
            vmem_limit_bytes=vmem_limit),
    )(x, t)

    # Tiny final reduce + dice/CE formula in the wrapper (works for any core split).
    inter = jnp.sum(out[:, :, 0:8, :])
    sum_logp = jnp.sum(out[:, :, 8:16, :])
    nval = jnp.sum(out[:, :, 16:24, :])

    # sum(softmax) = sum(one_hot) = 1 per real pixel -> denominator is 2*N*HW + smooth.
    dice = (2.0 * inter + float(smooth)) / (2.0 * N * HW + float(smooth))
    # Clamp avoids 0/0 -> NaN in the degenerate all-ignored case (PyTorch would return NaN).
    ce = -sum_logp / jnp.maximum(nval, 1.0)
    return dice_weight * (1.0 - dice) + (1.0 - dice_weight) * ce


def _reference(logits, targets, dice_weight=0.5, ignore_index=255, smooth=1.0):
    """Plain-JAX replica of the PyTorch module, for verification."""
    N, C, H, W = logits.shape
    logp = jax.nn.log_softmax(logits.astype(jnp.float32), axis=1)
    p = jnp.exp(logp)
    valid = targets != ignore_index
    t0 = jnp.where(valid, targets, 0)
    oh = jax.nn.one_hot(t0, C, axis=1, dtype=jnp.float32)      # (N, C, H, W)
    inter = jnp.sum(p * oh)
    dice = (2.0 * inter + smooth) / (jnp.sum(p) + jnp.sum(oh) + smooth)
    dice_loss = 1.0 - dice
    ce_per = -jnp.take_along_axis(logp, t0[:, None], axis=1)[:, 0]
    ce = jnp.sum(jnp.where(valid, ce_per, 0.0)) / jnp.sum(valid)
    return dice_weight * dice_loss + (1.0 - dice_weight) * ce


if __name__ == "__main__":
    key = jax.random.PRNGKey(0)
    k1, k2, k3 = jax.random.split(key, 3)

    N, C, H, W = 2, 4, 16, 16
    logits = jax.random.normal(k1, (N, C, H, W), dtype=jnp.float32)
    targets = jax.random.randint(k2, (N, H, W), 0, C, dtype=jnp.int32)
    # sprinkle some ignore_index pixels like a real segmentation mask
    ignore_mask = jax.random.uniform(k3, (N, H, W)) < 0.1
    targets = jnp.where(ignore_mask, jnp.int32(255), targets)

    loss = jax.block_until_ready(dice_cross_entropy_loss(logits, targets))
    ref = jax.block_until_ready(_reference(logits, targets))

    assert jnp.isfinite(loss)
    assert abs(float(loss) - float(ref)) < 1e-4, (float(loss), float(ref))
    print("KERNEL_OK")
</pallas_src>

<mosaic_0001>
module attributes {stable_mosaic.version = 11 : i64} {
  func.func @_dice_ce_kernel(%arg0: i32, %arg1: i32, %arg2: i32, %arg3: memref<1x4x8x128xf32, #tpu.memory_space<vmem>>, %arg4: memref<1x8x128xi32, #tpu.memory_space<vmem>>, %arg5: memref<1x1x24x128xf32, #tpu.memory_space<vmem>>) attributes {dimension_semantics = [#tpu.dimension_semantics<parallel>, #tpu.dimension_semantics<parallel>, #tpu.dimension_semantics<arbitrary>], iteration_bounds = array<i64: 2, 1, 1>, scalar_prefetch = 0 : i64, scratch_operands = 0 : i64, tpu.core_type = #tpu.core_type<tc>, window_params = [{transform_indices = @transform_0, window_bounds = array<i64: 1, 4, 8, 128>}, {transform_indices = @transform_1, window_bounds = array<i64: 1, 8, 128>}, {transform_indices = @transform_2, window_bounds = array<i64: 1, 1, 24, 128>}]} {
    %c0_i32 = arith.constant 0 : i32
    %0 = arith.cmpi eq, %arg2, %c0_i32 : i32
    %1 = arith.extui %0 : i1 to i32
    %c0_i32_0 = arith.constant 0 : i32
    %2 = arith.cmpi ne, %1, %c0_i32_0 : i32
    scf.if %2 {
      %cst_52 = arith.constant 0.000000e+00 : f32
      %97 = vector.broadcast %cst_52 : f32 to vector<24x128xf32>
      %c0_53 = arith.constant 0 : index
      %c0_54 = arith.constant 0 : index
      %c0_55 = arith.constant 0 : index
      %c0_56 = arith.constant 0 : index
      %98 = vector.load %arg5[%c0_53, %c0_54, %c0_55, %c0_56] : memref<1x1x24x128xf32, #tpu.memory_space<vmem>>, vector<1x1x24x128xf32>
      %99 = vector.shape_cast %98 : vector<1x1x24x128xf32> to vector<24x128xf32>
      %100 = vector.shape_cast %97 : vector<24x128xf32> to vector<1x1x24x128xf32>
      tpu.vector_store %arg5[%c0_53, %c0_54, %c0_55, %c0_56], %100 {strides = array<i32>} : memref<1x1x24x128xf32, #tpu.memory_space<vmem>>, vector<1x1x24x128xf32>,
    } else {
    }
    %c0 = arith.constant 0 : index
    %c0_1 = arith.constant 0 : index
    %c0_2 = arith.constant 0 : index
    %3 = vector.load %arg4[%c0, %c0_1, %c0_2] : memref<1x8x128xi32, #tpu.memory_space<vmem>>, vector<1x8x128xi32>
    %4 = vector.shape_cast %3 : vector<1x8x128xi32> to vector<8x128xi32>
    %c255_i32 = arith.constant 255 : i32
    %5 = vector.broadcast %c255_i32 : i32 to vector<8x128xi32>
    %6 = arith.cmpi ne, %4, %5 : vector<8x128xi32>
    %c0_i32_3 = arith.constant 0 : i32
    %7 = vector.broadcast %c0_i32_3 : i32 to vector<8x128xi32>
    %8 = arith.cmpi sge, %4, %7 : vector<8x128xi32>
    %9 = arith.andi %6, %8 : vector<8x128xi1>
    %10 = arith.extui %9 : vector<8x128xi1> to vector<8x128xi32>
    %11 = arith.sitofp %10 : vector<8x128xi32> to vector<8x128xf32>
    %c255_i32_4 = arith.constant 255 : i32
    %12 = vector.broadcast %c255_i32_4 : i32 to vector<8x128xi32>
    %13 = arith.cmpi eq, %4, %12 : vector<8x128xi32>
    %c0_i32_5 = arith.constant 0 : i32
    %14 = vector.broadcast %c0_i32_5 : i32 to vector<8x128xi32>
    %15 = arith.select %13, %14, %4 : vector<8x128xi1>, vector<8x128xi32>
    %c0_6 = arith.constant 0 : index
    %c0_7 = arith.constant 0 : index
    %c0_8 = arith.constant 0 : index
    %c0_9 = arith.constant 0 : index
    %16 = vector.load %arg3[%c0_6, %c0_7, %c0_8, %c0_9] : memref<1x4x8x128xf32, #tpu.memory_space<vmem>>, vector<1x1x8x128xf32>
    %17 = vector.shape_cast %16 : vector<1x1x8x128xf32> to vector<8x128xf32>
    %c0_10 = arith.constant 0 : index
    %c1 = arith.constant 1 : index
    %c0_11 = arith.constant 0 : index
    %c0_12 = arith.constant 0 : index
    %18 = vector.load %arg3[%c0_10, %c1, %c0_11, %c0_12] : memref<1x4x8x128xf32, #tpu.memory_space<vmem>>, vector<1x1x8x128xf32>
    %19 = vector.shape_cast %18 : vector<1x1x8x128xf32> to vector<8x128xf32>
    %c0_13 = arith.constant 0 : index
    %c2 = arith.constant 2 : index
    %c0_14 = arith.constant 0 : index
    %c0_15 = arith.constant 0 : index
    %20 = vector.load %arg3[%c0_13, %c2, %c0_14, %c0_15] : memref<1x4x8x128xf32, #tpu.memory_space<vmem>>, vector<1x1x8x128xf32>
    %21 = vector.shape_cast %20 : vector<1x1x8x128xf32> to vector<8x128xf32>
    %c0_16 = arith.constant 0 : index
    %c3 = arith.constant 3 : index
    %c0_17 = arith.constant 0 : index
    %c0_18 = arith.constant 0 : index
    %22 = vector.load %arg3[%c0_16, %c3, %c0_17, %c0_18] : memref<1x4x8x128xf32, #tpu.memory_space<vmem>>, vector<1x1x8x128xf32>
    %23 = vector.shape_cast %22 : vector<1x1x8x128xf32> to vector<8x128xf32>
    %24 = arith.maximumf %17, %19 : vector<8x128xf32>
    %25 = arith.maximumf %24, %21 : vector<8x128xf32>
    %26 = arith.maximumf %25, %23 : vector<8x128xf32>
    %cst = arith.constant 0.000000e+00 : f32
    %27 = vector.broadcast %cst : f32 to vector<8x128xf32>
    %cst_19 = arith.constant 0.000000e+00 : f32
    %28 = vector.broadcast %cst_19 : f32 to vector<8x128xf32>
    %cst_20 = arith.constant 0.000000e+00 : f32
    %29 = vector.broadcast %cst_20 : f32 to vector<8x128xf32>
    %30 = arith.subf %17, %26 : vector<8x128xf32>
    %31 = math.exp %30 : vector<8x128xf32>
    %32 = arith.addf %27, %31 : vector<8x128xf32>
    %c0_i32_21 = arith.constant 0 : i32
    %33 = vector.broadcast %c0_i32_21 : i32 to vector<8x128xi32>
    %34 = arith.cmpi eq, %15, %33 : vector<8x128xi32>
    %cst_22 = arith.constant 0.000000e+00 : f32
    %35 = vector.broadcast %cst_22 : f32 to vector<8x128xf32>
    %36 = arith.select %34, %31, %35 : vector<8x128xi1>, vector<8x128xf32>
    %37 = arith.addf %28, %36 : vector<8x128xf32>
    %cst_23 = arith.constant 0.000000e+00 : f32
    %38 = vector.broadcast %cst_23 : f32 to vector<8x128xf32>
    %39 = arith.select %34, %17, %38 : vector<8x128xi1>, vector<8x128xf32>
    %40 = arith.addf %29, %39 : vector<8x128xf32>
    %41 = arith.subf %19, %26 : vector<8x128xf32>
    %42 = math.exp %41 : vector<8x128xf32>
    %43 = arith.addf %32, %42 : vector<8x128xf32>
    %c1_i32 = arith.constant 1 : i32
    %44 = vector.broadcast %c1_i32 : i32 to vector<8x128xi32>
    %45 = arith.cmpi eq, %15, %44 : vector<8x128xi32>
    %cst_24 = arith.constant 0.000000e+00 : f32
    %46 = vector.broadcast %cst_24 : f32 to vector<8x128xf32>
    %47 = arith.select %45, %42, %46 : vector<8x128xi1>, vector<8x128xf32>
    %48 = arith.addf %37, %47 : vector<8x128xf32>
    %cst_25 = arith.constant 0.000000e+00 : f32
    %49 = vector.broadcast %cst_25 : f32 to vector<8x128xf32>
    %50 = arith.select %45, %19, %49 : vector<8x128xi1>, vector<8x128xf32>
    %51 = arith.addf %40, %50 : vector<8x128xf32>
    %52 = arith.subf %21, %26 : vector<8x128xf32>
    %53 = math.exp %52 : vector<8x128xf32>
    %54 = arith.addf %43, %53 : vector<8x128xf32>
    %c2_i32 = arith.constant 2 : i32
    %55 = vector.broadcast %c2_i32 : i32 to vector<8x128xi32>
    %56 = arith.cmpi eq, %15, %55 : vector<8x128xi32>
    %cst_26 = arith.constant 0.000000e+00 : f32
    %57 = vector.broadcast %cst_26 : f32 to vector<8x128xf32>
    %58 = arith.select %56, %53, %57 : vector<8x128xi1>, vector<8x128xf32>
    %59 = arith.addf %48, %58 : vector<8x128xf32>
    %cst_27 = arith.constant 0.000000e+00 : f32
    %60 = vector.broadcast %cst_27 : f32 to vector<8x128xf32>
    %61 = arith.select %56, %21, %60 : vector<8x128xi1>, vector<8x128xf32>
    %62 = arith.addf %51, %61 : vector<8x128xf32>
    %63 = arith.subf %23, %26 : vector<8x128xf32>
    %64 = math.exp %63 : vector<8x128xf32>
    %65 = arith.addf %54, %64 : vector<8x128xf32>
    %c3_i32 = arith.constant 3 : i32
    %66 = vector.broadcast %c3_i32 : i32 to vector<8x128xi32>
    %67 = arith.cmpi eq, %15, %66 : vector<8x128xi32>
    %cst_28 = arith.constant 0.000000e+00 : f32
    %68 = vector.broadcast %cst_28 : f32 to vector<8x128xf32>
    %69 = arith.select %67, %64, %68 : vector<8x128xi1>, vector<8x128xf32>
    %70 = arith.addf %59, %69 : vector<8x128xf32>
    %cst_29 = arith.constant 0.000000e+00 : f32
    %71 = vector.broadcast %cst_29 : f32 to vector<8x128xf32>
    %72 = arith.select %67, %23, %71 : vector<8x128xi1>, vector<8x128xf32>
    %73 = arith.addf %62, %72 : vector<8x128xf32>
    %74 = arith.divf %70, %65 : vector<8x128xf32>
    %75 = arith.subf %73, %26 : vector<8x128xf32>
    %76 = math.log %65 : vector<8x128xf32>
    %77 = arith.subf %75, %76 : vector<8x128xf32>
    %c0_30 = arith.constant 0 : index
    %c0_31 = arith.constant 0 : index
    %c0_32 = arith.constant 0 : index
    %c0_33 = arith.constant 0 : index
    %78 = vector.load %arg5[%c0_30, %c0_31, %c0_32, %c0_33] : memref<1x1x24x128xf32, #tpu.memory_space<vmem>>, vector<1x1x8x128xf32>
    %79 = vector.shape_cast %78 : vector<1x1x8x128xf32> to vector<8x128xf32>
    %80 = arith.addf %79, %74 : vector<8x128xf32>
    %c0_34 = arith.constant 0 : index
    %c0_35 = arith.constant 0 : index
    %c0_36 = arith.constant 0 : index
    %c0_37 = arith.constant 0 : index
    %81 = vector.load %arg5[%c0_34, %c0_35, %c0_36, %c0_37] : memref<1x1x24x128xf32, #tpu.memory_space<vmem>>, vector<1x1x8x128xf32>
    %82 = vector.shape_cast %81 : vector<1x1x8x128xf32> to vector<8x128xf32>
    %83 = vector.shape_cast %80 : vector<8x128xf32> to vector<1x1x8x128xf32>
    tpu.vector_store %arg5[%c0_34, %c0_35, %c0_36, %c0_37], %83 {strides = array<i32>} : memref<1x1x24x128xf32, #tpu.memory_space<vmem>>, vector<1x1x8x128xf32>,
    %c0_38 = arith.constant 0 : index
    %c0_39 = arith.constant 0 : index
    %c8 = arith.constant 8 : index
    %c0_40 = arith.constant 0 : index
    %84 = vector.load %arg5[%c0_38, %c0_39, %c8, %c0_40] : memref<1x1x24x128xf32, #tpu.memory_space<vmem>>, vector<1x1x8x128xf32>
    %85 = vector.shape_cast %84 : vector<1x1x8x128xf32> to vector<8x128xf32>
    %86 = arith.mulf %77, %11 : vector<8x128xf32>
    %87 = arith.addf %85, %86 : vector<8x128xf32>
    %c0_41 = arith.constant 0 : index
    %c0_42 = arith.constant 0 : index
    %c8_43 = arith.constant 8 : index
    %c0_44 = arith.constant 0 : index
    %88 = vector.load %arg5[%c0_41, %c0_42, %c8_43, %c0_44] : memref<1x1x24x128xf32, #tpu.memory_space<vmem>>, vector<1x1x8x128xf32>
    %89 = vector.shape_cast %88 : vector<1x1x8x128xf32> to vector<8x128xf32>
    %90 = vector.shape_cast %87 : vector<8x128xf32> to vector<1x1x8x128xf32>
    tpu.vector_store %arg5[%c0_41, %c0_42, %c8_43, %c0_44], %90 {strides = array<i32>} : memref<1x1x24x128xf32, #tpu.memory_space<vmem>>, vector<1x1x8x128xf32>,
    %c0_45 = arith.constant 0 : index
    %c0_46 = arith.constant 0 : index
    %c16 = arith.constant 16 : index
    %c0_47 = arith.constant 0 : index
    %91 = vector.load %arg5[%c0_45, %c0_46, %c16, %c0_47] : memref<1x1x24x128xf32, #tpu.memory_space<vmem>>, vector<1x1x8x128xf32>
    %92 = vector.shape_cast %91 : vector<1x1x8x128xf32> to vector<8x128xf32>
    %93 = arith.addf %92, %11 : vector<8x128xf32>
    %c0_48 = arith.constant 0 : index
    %c0_49 = arith.constant 0 : index
    %c16_50 = arith.constant 16 : index
    %c0_51 = arith.constant 0 : index
    %94 = vector.load %arg5[%c0_48, %c0_49, %c16_50, %c0_51] : memref<1x1x24x128xf32, #tpu.memory_space<vmem>>, vector<1x1x8x128xf32>
    %95 = vector.shape_cast %94 : vector<1x1x8x128xf32> to vector<8x128xf32>
    %96 = vector.shape_cast %93 : vector<8x128xf32> to vector<1x1x8x128xf32>
    tpu.vector_store %arg5[%c0_48, %c0_49, %c16_50, %c0_51], %96 {strides = array<i32>} : memref<1x1x24x128xf32, #tpu.memory_space<vmem>>, vector<1x1x8x128xf32>,
    return
  }
  func.func @transform_0(%arg0: i32, %arg1: i32, %arg2: i32) -> (i32, i32, i32, i32) {
    %c1_i32 = arith.constant 1 : i32
    %0 = arith.muli %arg1, %c1_i32 : i32
    %1 = arith.addi %0, %arg2 : i32
    %c0_i32 = arith.constant 0 : i32
    %c0_i32_0 = arith.constant 0 : i32
    %c0_i32_1 = arith.constant 0 : i32
    return %arg0, %c0_i32, %1, %c0_i32_0 : i32, i32, i32, i32
  }
  func.func @transform_1(%arg0: i32, %arg1: i32, %arg2: i32) -> (i32, i32, i32) {
    %c1_i32 = arith.constant 1 : i32
    %0 = arith.muli %arg1, %c1_i32 : i32
    %1 = arith.addi %0, %arg2 : i32
    %c0_i32 = arith.constant 0 : i32
    %c0_i32_0 = arith.constant 0 : i32
    return %arg0, %1, %c0_i32 : i32, i32, i32
  }
  func.func @transform_2(%arg0: i32, %arg1: i32, %arg2: i32) -> (i32, i32, i32, i32) {
    %c0_i32 = arith.constant 0 : i32
    %c0_i32_0 = arith.constant 0 : i32
    %c0_i32_1 = arith.constant 0 : i32
    return %arg0, %arg1, %c0_i32, %c0_i32_0 : i32, i32, i32, i32
  }
}

</mosaic_0001>

<bundles_post_ra>
// kernel: tpu_custom_call.1
= control target key start
LH: loop header
LB: loop body
LE: loop exit
PB: predicated region body
PF: predicated region fallthrough
CT: control target
= control target key end

     0   :  { %7 = vsyncpa [#allocation3], 0  ;;  %s943_s0 = inlined_call_operand.hbm [shape: f32[2,4,8,128], index: 0, kind: input, shape index: {}]   ;;  %s944_s1 = inlined_call_operand.hbm [shape: s32[2,8,128], index: 1, kind: input, shape index: {}]   ;;  %s945_s2 = inlined_call_operand.hbm [shape: f32[2,1,24,128], index: 2, kind: output, shape index: {}]  }
   0x1   :  { %9 = vsyncpa [#allocation3 + $0x1], 0 }
   0x2   :  { %10 = vsyncpa [#allocation6], 0 }
   0x3   :  { %12 = vsyncpa [#allocation6 + $0x1], 0 }
   0x4   :  { %13 = vsyncpa [#allocation4], 0 }
   0x5   :  { %15 = vsyncpa [#allocation4 + $0x1], 0  ;;  %s719_s9 = smov 0   ;;  %s721_s10 = smov 0  }
   0x6   :  { %s723_s11 = smov 0   ;;  %s725_s12 = smov 0  }
   0x7   :  { %s727_s13 = smov 0   ;;  %s729_s14 = smov 0  }
   0x8 LB: > { %s442_s15 = sadd.s32 4294967295, %s694_s14   ;;  %s443_s16 = sadd.s32 4294967294, %s694_s14   ;;  %s694_s14 = sphi %s729_s14, %s21_s14   ;;  %s690_s13 = sphi %s727_s13, %s964_s13   ;;  %s686_s12 = sphi %s725_s12, %s963_s12   ;;  %s682_s11 = sphi %s723_s11, %s962_s11   ;;  %s678_s10 = sphi %s721_s10, %s961_s10   ;;  %s674_s9 = sphi %s719_s9, %s960_s9  }
   0x9   : > { %s40_s17 = sadd.s32 1, %s690_s13  ;;  %s51_s18 = sadd.s32 1, %s682_s11 }
   0xa   : > { %p42_p0 = scmp.ge.s32.totalorder %s40_s17, 2  ;;  %p58_p1 = scmp.ne.s32.totalorder %s682_s11, %s678_s10 }
   0xb   : > { %p59_p2 = scmp.eq.s32.totalorder %s694_s14, 0  ;;  %p64_p3 = scmp.ne.s32.totalorder %s678_s10, %s674_s9 }
   0xc   : > { %s966_s17 = smov (%p42_p0, %s40_s17), 0  ;;  %p65_p5 = scmp.eq.s32.totalorder %s442_s15, 0 }
   0xd   : > { %p760_p4 = por %p59_p2, %p58_p1  ;;  %s46_s20 = ssub.s32 %s690_s13, %s966_s17 }
   0xe   : > { %p120_p6 = scmp.eq.s32.totalorder %s442_s15, 1  ;;  %p49_p7 = scmp.eq.s32.totalorder %s46_s20, 0 }
   0xf   : > { %p766_p8 = por %p65_p5, %p64_p3  ;;  %p126_p10 = scmp.eq.s32.totalorder %s443_s16, 1 }
  0x10   : > { %p770_p9 = por %p120_p6, %p58_p1  ;;  %p481_p13 = scmp.lt.s32.totalorder %s694_s14, 2 }
  0x11   : > { %s949_s21 = scalar_select %p766_p8, 1, 0 }
  0x12   : > { %s950_s22 = scalar_select %p770_p9, 1, 0 }
  0x13   : > { %s775_s23 = scalar_select %p49_p7, %s682_s11, %s51_s18  }
  0x14   : > { %p777_p11 = por %p126_p10, %p64_p3  ;;  %s784_s25 = sand.u32 1, %s682_s11  }
  0x15   : > { %s446_s26 = sshll.u32 %s784_s25, 5  ;;  %s461_s27 = sshll.u32 %s690_s13, 9 }
  0x16   : > { %s951_s24 = scalar_select %p777_p11, 1, 0 }
  0x17   : > { %s791_s30 = scalar_lea.hbm %s943_s0, %s461_s27  ;;  %s150_s3 = scalar_lea.vmem [#allocation2], %s446_s26 }
  0x18   : > { %s159_s4 = sshll.u32 %s150_s3, 4  ;;  %p797_p0 = pnand %p481_p13, %p760_p4  ;;  %s793_s4 = int_to_ptr.vmem [resolvable:$true] %s159_s4 }
  0x19   : > { %s147_s6 = scalar_lea.sflag [#allocation3], %s784_s25  ;;  %s548_s7 = scalar_lea.hbm %s791_s30, 512 }
  0x1a   : > { %p549_p2 = scmp.ne.s32.totalorder %s791_s30, %s548_s7  ;;  %p550_p3 = pneg %p797_p0 }
  0x1b   : > { %s553_s16 = scalar_lea.hbm %s943_s0, 1024  ;;  %p554_p4 = scmp.lt.u32.totalorder %s791_s30, %s943_s0 }
  0x1c   : > { %p551_p5 = pnand %p550_p3, %p549_p2  ;;  %p555_p7 = scmp.lt.u32.totalorder %s553_s16, %s548_s7 }
  0x1d   : > { %p557_p13 = scmp.lt.u32.totalorder %s548_s7, %s791_s30 }
  0x1e   : > { %p552_p6 = pneg %p551_p5  ;;  %p556_p10 = por %p555_p7, %p554_p4 }
  0x20   : > { %p558_p12 = por %p557_p13, %p556_p10 }
  0x22   : > { %p559_p1 = pnand %p558_p12, %p552_p6 }
  0x24   : > { %562 = shalt.err (!%p559_p1)
}
  0x25   : > { %s563_s20 = scalar_lea.vmem %s793_s4, 512  ;;  %s696_s26 = smov [#allocation2]  }
  0x26   : > { %p564_p2 = scmp.ne.s32.totalorder %s793_s4, %s563_s20  ;;  %s568_s27 = sshll.u32 %s696_s26, 4  ;;  %s569_s27 = int_to_ptr.vmem [resolvable:$false] %s568_s27 }
  0x27   : > { %s570_s28 = scalar_lea.vmem %s569_s27, 1024  ;;  %p571_p9 = scmp.lt.s32.totalorder %s793_s4, %s569_s27 }
  0x28   : > { %p566_p5 = pnand %p564_p2, %p550_p3  ;;  %p572_p4 = scmp.lt.s32.totalorder %s570_s28, %s563_s20 }
  0x2a   : > { %p567_p11 = pneg %p566_p5  ;;  %p573_p7 = por %p572_p4, %p571_p9 }
  0x2c   : > { %p574_p10 = pnand %p573_p7, %p567_p11 }
  0x2e   : > { %577 = shalt.err (!%p574_p10)
}
  0x2f   : > { %s697_s29 = smov 128   ;;  %s698_s3 = smov 8  }
  0x30   : > { %473 = dma.hbm_to_vmem [thread:$0]  (!%p797_p0), %s791_s30, 512, %s793_s4, %s147_s6, %s697_s29, %s697_s29, %s698_s3  }
  0x31   : > { %p187_p12 = scmp.lt.s32.totalorder %s694_s14, 3  ;;  %s449_s7 = sshll.u32 %s784_s25, 3 }
  0x32   : > { %s450_s8 = sshll.u32 %s690_s13, 7  ;;  %p953_p9 = scmp.ge.s32.totalorder %s694_s14, 1 }
  0x33   : > { %s842_s19 = scalar_lea.hbm %s944_s1, %s450_s8  ;;  %s173_s20 = scalar_lea.vmem [#allocation5], %s449_s7 }
  0x34   : > { %p835_p11 = pnand %p953_p9, %p187_p12  ;;  %s182_s26 = sshll.u32 %s173_s20, 4  ;;  %s183_s26 = int_to_ptr.vmem [resolvable:$true] %s182_s26 }
  0x35   : > { %s170_s30 = scalar_lea.sflag [#allocation6], %s784_s25  ;;  %s578_s4 = scalar_lea.hbm %s842_s19, 128 }
  0x36   : > { %s954_s15 = scalar_select %p835_p11, 1, 0 }
  0x37   : > { %p579_p1 = scmp.ne.s32.totalorder %s842_s19, %s578_s4  ;;  %s583_s28 = scalar_lea.hbm %s944_s1, 256 }
  0x38   : > { %p584_p2 = scmp.lt.u32.totalorder %s842_s19, %s944_s1  ;;  %p585_p5 = scmp.lt.u32.totalorder %s583_s28, %s578_s4 }
  0x39   : > { %p581_p6 = pnand %p579_p1, %p550_p3  ;;  %p587_p7 = scmp.lt.u32.totalorder %s578_s4, %s842_s19 }
  0x3a   : > { %p586_p4 = por %p585_p5, %p584_p2 }
  0x3b   : > { %p582_p13 = pneg %p581_p6 }
  0x3c   : > { %p588_p10 = por %p587_p7, %p586_p4 }
  0x3e   : > { %p589_p12 = pnand %p588_p10, %p582_p13 }
  0x40   : > { %592 = shalt.err (!%p589_p12)
}
  0x41   : > { %s593_s25 = scalar_lea.vmem %s183_s26, 128  ;;  %s699_s7 = smov [#allocation5]  }
  0x42   : > { %p594_p9 = scmp.ne.s32.totalorder %s183_s26, %s593_s25  ;;  %s598_s8 = sshll.u32 %s699_s7, 4  ;;  %s599_s8 = int_to_ptr.vmem [resolvable:$false] %s598_s8 }
  0x43   : > { %s600_s16 = scalar_lea.vmem %s599_s8, 256  ;;  %p601_p8 = scmp.lt.s32.totalorder %s183_s26, %s599_s8 }
  0x44   : > { %p596_p1 = pnand %p594_p9, %p550_p3  ;;  %p602_p11 = scmp.lt.s32.totalorder %s600_s16, %s593_s25 }
  0x46   : > { %p597_p6 = pneg %p596_p1  ;;  %p603_p2 = por %p602_p11, %p601_p8 }
  0x48   : > { %p604_p5 = pnand %p603_p2, %p597_p6 }
  0x4a   : > { %607 = shalt.err (!%p604_p5)
}
  0x4b   : > { %476 = dma.hbm_to_vmem [thread:$0]  (!%p797_p0), %s842_s19, 128, %s183_s26, %s170_s30  }
  0x4c   : > { %p955_p13 = scmp.ne.s32.totalorder %s954_s15, 0 }
  0x4d   : > { %s867_s18 = sand.u32 (!%p955_p13), 1, %s678_s10   ;;  %p956_p3 = scmp.ne.s32.totalorder (!%p955_p13), %s949_s21, 0 }
  0x4e   : > { %191 = sbr.rel (%p955_p13) target bundleno = 152 (0x98), region = 28  ;;  %s452_s20 = sshll.u32 (!%p955_p13), %s867_s18, 5 }
  0x4f   : > { %s194_s4 = scalar_lea.sflag (!%p955_p13), [#allocation3], %s867_s18  ;;  %s197_s6 = scalar_lea.vmem (!%p955_p13), [#allocation2], %s452_s20 }
  0x55   : > { %661 = dma.done.wait (%p956_p3), %s194_s4, 512  }
  0x56   : > { %663 = vsyncadd (%p956_p3), %s194_s4, 4294966784  ;;  %s453_s5 = sshll.u32 %s867_s18, 3  ;;  %s203_s15 = scalar_lea.sflag [#allocation6], %s867_s18 }
  0x57   : > { %s206_s19 = scalar_lea.vmem [#allocation5], %s453_s5 }
  0x58   : > { %665 = dma.done.wait (%p956_p3), %s203_s15, 128  }
  0x59   : > { %667 = vsyncadd (%p956_p3), %s203_s15, 4294967168  ;;  %v241_v0 = vld [vmem:[%s206_s19] sm:$0xff]  ;;  %s462_s26 = smul.u32 24, %s867_s18  ;;  %v456_v3 = vld [vmem:[%s197_s6 + $0x10] sm:$0xff]  ;;  %v700_v7 = vmov 0.0   ;;  %s312_s25 = scalar_lea.sflag [#allocation4], %s867_s18 }
  0x5a   : > { %v249_v1 = vld [vmem:[%s197_s6] sm:$0xff]  ;;  %v455_v2 = vld [vmem:[%s197_s6 + $0x8] sm:$0xff]  ;;  %vm242_vm0 = vcmp.ne.s32.totalorder %v241_v0, 255  ;;  %vm243_vm1 = vcmp.ge.s32.totalorder %v241_v0, 0  ;;  %v457_v5 = vld [vmem:[%s197_s6 + $0x18] sm:$0xff]  ;;  %vm247_vm3 = vcmp.eq.s32.totalorder %v241_v0, 255 }
  0x5b   : > { %v256_v4 = vmax.f32 %v249_v1, %v455_v2  ;;  %vm244_vm2 = vmand %vm242_vm0, %vm243_vm1  ;;  %s882_s21 = scalar_lea.vmem [#allocation7], %s462_s26  ;;  %v248_v18 = vsel %vm247_vm3, 0, %v241_v0  ;;  %s463_s30 = smul.u32 384, %s686_s12 }
  0x5c   : > { %v454_v8 = vsel %vm244_vm2, 1.0, %v700_v7  ;;  %vm263_vm4 = vcmp.eq.s32.totalorder %v248_v18, 0  ;;  %vm272_vm5 = vcmp.eq.s32.totalorder %v248_v18, 1  ;;  %vm281_vm6 = vcmp.eq.s32.totalorder %v248_v18, 2  ;;  %s327_s27 = sshll.u32 %s882_s21, 4  ;;  %p957_p0 = scmp.ne.s32.totalorder %s950_s22, 0  ;;  %s893_s27 = int_to_ptr.vmem [resolvable:$true] %s327_s27 }
  0x5d   : > { %v257_v6 = vmax.f32 %v256_v4, %v456_v3  ;;  %310 = vst [vmem:[%s882_s21 + $0x10] sm:$0xff] %v454_v8  ;;  %v266_v24 = vsel %vm263_vm4, %v249_v1, 0.0  ;;  %v275_v25 = vsel %vm272_vm5, %v455_v2, 0.0  ;;  %v284_v31 = vsel %vm281_vm6, %v456_v3, 0.0  ;;  %s891_s3 = scalar_lea.hbm %s945_s2, %s463_s30  ;;  %s608_s7 = scalar_lea.vmem %s893_s27, 384 }
  0x5e   : > { %v276_v29 = vadd.f32 %v275_v25, %v266_v24  ;;  %vm290_vm7 = vcmp.eq.s32.totalorder %v248_v18, 3  ;;  %p609_p8 = scmp.ne.s32.totalorder %s893_s27, %s608_s7  ;;  %s701_s12 = smov [#allocation7]  }
  0x5f   : > { %v258_v9 = vmax.f32 %v257_v6, %v457_v5  ;;  %v293_v35 = vsel %vm290_vm7, %v457_v5, 0.0  ;;  %s612_s8 = sshll.u32 %s701_s12, 4  ;;  %s613_s8 = int_to_ptr.vmem [resolvable:$false] %s612_s8 }
  0x60   : > { %v285_v34 = vadd.f32 %v284_v31, %v276_v29  ;;  %p610_p11 = pnand %p609_p8, %p957_p0  ;;  %s614_s16 = scalar_lea.vmem %s613_s8, 768 }
  0x61   : > { %v259_v10 = vsub.f32 %v249_v1, %v258_v9  ;;  %v268_v11 = vsub.f32 %v455_v2, %v258_v9  ;;  %v277_v12 = vsub.f32 %v456_v3, %v258_v9  ;;  %v286_v13 = vsub.f32 %v457_v5, %v258_v9  ;;  %p615_p7 = scmp.lt.s32.totalorder %s893_s27, %s613_s8  ;;  %p616_p10 = scmp.lt.s32.totalorder %s614_s16, %s608_s7 }
  0x62   : > { %v294_v38 = vadd.f32 %v293_v35, %v285_v34  ;;  %p611_p4 = pneg %p610_p11 }
  0x63   : > { %v260_v14 = vmul.f32 1.442695, %v259_v10  ;;  %v269_v15 = vmul.f32 1.442695, %v268_v11  ;;  %v278_v16 = vmul.f32 1.442695, %v277_v12  ;;  %p617_p12 = por %p616_p10, %p615_p7 }
  0x64   : > { %v287_v17 = vmul.f32 1.442695, %v286_v13  ;;  %v297_v41 = vsub.f32 %v294_v38, %v258_v9 }
  0x65   : > { %536 = vpow2.f32 %v260_v14  ;;  %p618_p9 = pnand %p617_p12, %p611_p4 }
  0x66   : > { %538 = vpow2.f32 %v269_v15 }
  0x67   : > { %540 = vpow2.f32 %v278_v16 }
  0x68   : > { %542 = vpow2.f32 %v287_v17 }
  0x6f   : > { %v537_v19 = vpop.eup %536 }
  0x70   : > { %v539_v20 = vpop.eup %538  ;;  %v264_v27 = vsel %vm263_vm4, %v537_v19, 0.0 }
  0x71   : > { %v541_v21 = vpop.eup %540  ;;  %v271_v22 = vadd.f32 %v539_v20, %v537_v19  ;;  %v273_v28 = vsel %vm272_vm5, %v539_v20, 0.0 }
  0x72   : > { %v543_v23 = vpop.eup %542  ;;  %v274_v32 = vadd.f32 %v273_v28, %v264_v27  ;;  %v282_v33 = vsel %vm281_vm6, %v541_v21, 0.0 }
  0x73   : > { %v280_v26 = vadd.f32 %v541_v21, %v271_v22  ;;  %v291_v37 = vsel %vm290_vm7, %v543_v23, 0.0 }
  0x74   : > { %v283_v36 = vadd.f32 %v282_v33, %v274_v32 }
  0x75   : > { %v289_v30 = vadd.f32 %v543_v23, %v280_v26 }
  0x76   : > { %v292_v39 = vadd.f32 %v291_v37, %v283_v36 }
  0x77   : > { %544 = vrcp.f32 %v289_v30 }
  0x78   : > { %546 = vlog2.f32 %v289_v30 }
  0x81   : > { %v545_v40 = vpop.eup %544 }
  0x82   : > { %v547_v42 = vpop.eup %546  ;;  %v296_v43 = vmul.f32 %v545_v40, %v292_v39 }
  0x83   : > { %v299_v44 = vmul.f32 0.6931472, %v547_v42 }
  0x84   : > { %303 = vst [vmem:[%s882_s21] sm:$0xff] %v296_v43 }
  0x85   : > { %v300_v45 = vsub.f32 %v297_v41, %v299_v44 }
  0x87   : > { %v305_v46 = vmul.f32 %v454_v8, %v300_v45 }
  0x89   : > { %307 = vst [vmem:[%s882_s21 + $0x8] sm:$0xff] %v305_v46 }
  0x8a   : > { %621 = shalt.err (!%p618_p9)
}
  0x8b   : > { %s622_s20 = scalar_lea.hbm %s891_s3, 384  ;;  %s626_s5 = scalar_lea.hbm %s945_s2, 768 }
  0x8c   : > { %p623_p1 = scmp.ne.s32.totalorder %s891_s3, %s622_s20  ;;  %p627_p5 = scmp.lt.u32.totalorder %s891_s3, %s945_s2 }
  0x8d   : > { %p628_p13 = scmp.lt.u32.totalorder %s626_s5, %s622_s20  ;;  %p630_p8 = scmp.lt.u32.totalorder %s622_s20, %s891_s3 }
  0x8e   : > { %p624_p6 = pnand %p623_p1, %p957_p0 }
  0x8f   : > { %p629_p3 = por %p628_p13, %p627_p5 }
  0x90   : > { %p625_p2 = pneg %p624_p6 }
  0x91   : > { %p631_p11 = por %p630_p8, %p629_p3 }
  0x93   : > { %p632_p4 = pnand %p631_p11, %p625_p2 }
  0x95   : > { %635 = shalt.err (!%p632_p4)
}
  0x96   : > { %s702_s26 = smov 128   ;;  %s703_s21 = smov 8  }
  0x97   : > { %468 = dma.vmem_to_hbm [thread:$0]  (%p957_p0), %s893_s27, 384, %s891_s3, %s312_s25, %s702_s26, %s702_s26, %s703_s21  }
  0x98 PF: > { %s342_s30 = sand.u32 1, %s674_s9   ;;  %p958_p7 = scmp.ne.s32.totalorder %s951_s24, 0 }
  0x99   : > { %p959_p10 = scmp.ge.s32.totalorder %s694_s14, 2  ;;  %s343_s28 = scalar_lea.sflag [#allocation4], %s342_s30 }
  0x9b   : > { %p478_p12 = pnand %p959_p10, %p958_p7 }
  0x9d   : > { %669 = dma.done.wait (!%p478_p12), %s343_s28, 384  }
  0x9e   : > { %671 = vsyncadd (!%p478_p12), %s343_s28, 4294966912  ;;  %s21_s14 = sadd.s32 1, %s694_s14   ;;  %s960_s9 = smov %s678_s10 }
  0x9f   : > { %p18_p9 = scmp.ge.s32.totalorder %s21_s14, 4   ;;  %s961_s10 = smov %s682_s11 }
  0xa0   : > { %s962_s11 = smov %s775_s23  ;;  %s963_s12 = smov %s690_s13 }
  0xa1   : > { %s964_s13 = smov %s966_s17  ;;  %20 = sbr.rel (!%p18_p9) target bundleno = 8 (0x8), region = 93 }
  0xa8   :  { %348 = vsyncpa [#allocation3], 1 }
  0xa9   :  { %350 = vsyncpa [#allocation3 + $0x1], 1 }
  0xaa   :  { %351 = vsyncpa [#allocation6], 1 }
  0xab   :  { %353 = vsyncpa [#allocation6 + $0x1], 1 }
  0xac   :  { %354 = vsyncpa [#allocation4], 1 }
  0xad   :  { %356 = vsyncpa [#allocation4 + $0x1], 1 }

</bundles_post_ra>
